<compile_context>
chip_gen: v5e
topology: v5e:2x2
jax: 0.10.0
libtpu: 0.0.40
codegen_flags: <defaults>
</compile_context>

<pallas_src>
import functools

import jax
import jax.numpy as jnp
from jax.experimental import pallas as pl
from jax.experimental.pallas import tpu as pltpu


def _learnable_sigmoid_kernel(x_ref, slope_ref, o_ref, *, beta):
    # x_ref:     (row_tile, Fl) tile of the (lane-dense) flattened input
    # slope_ref: (1, Fl)        slope row, broadcast over the row axis
    x = x_ref[...].astype(jnp.float32)
    s = slope_ref[...].astype(jnp.float32)      # (1, Fl) broadcasts over rows
    y = jax.nn.sigmoid(s * x)                   # VPU mul + EUP sigmoid
    if beta != 1.0:                             # trace-time skip of no-op mul
        y = beta * y
    o_ref[...] = y.astype(o_ref.dtype)


def _sublane_multiple(dtype) -> int:
    # f32 -> 8, bf16/f16 -> 16, int8/fp8 -> 32 (sublane packing).
    itemsize = jnp.dtype(dtype).itemsize
    return {4: 8, 2: 16, 1: 32}.get(itemsize, 8)


def learnable_sigmoid(x, slope, beta=1.0, *, target_block_bytes=2 * 1024 * 1024):
    """beta * sigmoid(slope * x), slope broadcast over the last axis of x."""
    F = x.shape[-1]
    assert slope.shape == (F,), "slope must have shape (in_features,)"

    orig_shape = x.shape
    total = x.size
    itemsize = jnp.dtype(x.dtype).itemsize

    # ---- Choose a lane-dense 2-D layout (rows, Fl) with Fl a multiple of 128
    #      whenever the broadcast structure allows it. ----
    if F % 128 == 0:
        Fl = F
        x2 = x.reshape(-1, Fl)
        slope2 = slope.reshape(1, Fl)
    elif (128 % F == 0) and (total % 128 == 0):
        # Pack 128 // F consecutive logical rows into one 128-lane row.
        # Valid because rows are contiguous in F in the flat element order,
        # so tiling slope 128//F times reproduces the same broadcast.
        Fl = 128
        x2 = x.reshape(-1, Fl)
        slope2 = jnp.tile(slope, 128 // F).reshape(1, Fl)
    else:
        # Fallback: keep F as the lane axis (block last dim == full array dim,
        # so the (8,128) rule is still satisfied; stores may be masked).
        Fl = F
        x2 = x.reshape(-1, Fl)
        slope2 = slope.reshape(1, Fl)

    M = x2.shape[0]

    # ---- Row tile: ~target_block_bytes per block, sublane-aligned. ----
    sub = _sublane_multiple(x.dtype)
    rows_budget = (target_block_bytes // max(1, Fl * itemsize)) // sub * sub
    rows_budget = max(sub, rows_budget)
    if M <= rows_budget:
        row_tile = M          # small input: one block == full extent (legal)
    else:
        row_tile = rows_budget  # multiple of `sub`; ragged last block is masked

    grid = (pl.cdiv(M, row_tile),)

    out = pl.pallas_call(
        functools.partial(_learnable_sigmoid_kernel, beta=float(beta)),
        out_shape=jax.ShapeDtypeStruct((M, Fl), x.dtype),
        grid_spec=pltpu.PrefetchScalarGridSpec(
            num_scalar_prefetch=0,
            grid=grid,
            in_specs=[
                pl.BlockSpec((row_tile, Fl), lambda i: (i, 0)),  # x tile
                pl.BlockSpec((1, Fl), lambda i: (0, 0)),         # slope (shared)
            ],
            out_specs=pl.BlockSpec((row_tile, Fl), lambda i: (i, 0)),
        ),
        compiler_params=pltpu.CompilerParams(
            dimension_semantics=("parallel",),   # megacore-shard rows on v7x
            # 32 MiB is safe on v5e/v6e/v7x and gives headroom beyond the
            # v5e 16 MiB default for the double-buffered 2 MiB blocks.
            vmem_limit_bytes=32 * 1024 * 1024,
        ),
    )(x2, slope2)

    return out.reshape(orig_shape)


if __name__ == "__main__":
    # Small shapes consistent with the module: x = (batch, seq, in_features).
    batch, seq, in_features = 2, 8, 32
    beta = 1.0

    key = jax.random.PRNGKey(0)
    kx, ks = jax.random.split(key)
    x = jax.random.normal(kx, (batch, seq, in_features), dtype=jnp.float32)

    # Parameter init analogous to nn.Parameter(torch.ones(in_features)),
    # perturbed slightly so the broadcast path is actually exercised.
    slope = jnp.ones((in_features,), dtype=jnp.float32) \
        + 0.1 * jax.random.normal(ks, (in_features,), dtype=jnp.float32)

    y = learnable_sigmoid(x, slope, beta=beta)
    jax.block_until_ready(y)

    # Reference check in plain JAX.
    y_ref = beta * jax.nn.sigmoid(slope * x)
    assert y.shape == x.shape
    assert jnp.allclose(y, y_ref, atol=1e-6, rtol=1e-6), "mismatch vs reference"

    # Also exercise a larger, ragged-M, beta != 1 case to cover the tiled path.
    x_big = jax.random.normal(jax.random.PRNGKey(1), (3, 1000, in_features),
                              dtype=jnp.float32)
    y_big = learnable_sigmoid(x_big, slope, beta=2.0)
    jax.block_until_ready(y_big)
    y_big_ref = 2.0 * jax.nn.sigmoid(slope * x_big)
    assert jnp.allclose(y_big, y_big_ref, atol=1e-6, rtol=1e-6), "mismatch (big)"

    print("KERNEL_OK")
</pallas_src>

<mosaic_0001>
module attributes {stable_mosaic.version = 11 : i64} {
  func.func @_learnable_sigmoid_kernel(%arg0: i32, %arg1: memref<4x128xf32, #tpu.memory_space<vmem>>, %arg2: memref<1x128xf32, #tpu.memory_space<vmem>>, %arg3: memref<4x128xf32, #tpu.memory_space<vmem>>) attributes {dimension_semantics = [#tpu.dimension_semantics<parallel>], iteration_bounds = array<i64: 1>, scalar_prefetch = 0 : i64, scratch_operands = 0 : i64, tpu.core_type = #tpu.core_type<tc>, window_params = [{transform_indices = @transform_0, window_bounds = array<i64: 4, 128>}, {pipeline_mode = #tpu.pipeline_mode<synchronous>, transform_indices = @transform_1, window_bounds = array<i64: 1, 128>}, {transform_indices = @transform_2, window_bounds = array<i64: 4, 128>}]} {
    %c0 = arith.constant 0 : index
    %c0_0 = arith.constant 0 : index
    %0 = vector.load %arg1[%c0, %c0_0] : memref<4x128xf32, #tpu.memory_space<vmem>>, vector<4x128xf32>
    %c0_1 = arith.constant 0 : index
    %c0_2 = arith.constant 0 : index
    %1 = vector.load %arg2[%c0_1, %c0_2] : memref<1x128xf32, #tpu.memory_space<vmem>>, vector<1x128xf32>
    %2 = vector.broadcast %1 : vector<1x128xf32> to vector<4x128xf32>
    %3 = arith.mulf %2, %0 : vector<4x128xf32>
    %4 = arith.negf %3 : vector<4x128xf32>
    %5 = math.exp %4 : vector<4x128xf32>
    %cst = arith.constant 1.000000e+00 : f32
    %6 = vector.broadcast %cst : f32 to vector<4x128xf32>
    %7 = arith.addf %6, %5 : vector<4x128xf32>
    %8 = arith.divf %6, %7 : vector<4x128xf32>
    %c0_3 = arith.constant 0 : index
    %c0_4 = arith.constant 0 : index
    %9 = vector.load %arg3[%c0_3, %c0_4] : memref<4x128xf32, #tpu.memory_space<vmem>>, vector<4x128xf32>
    tpu.vector_store %arg3[%c0_3, %c0_4], %8 {strides = array<i32>} : memref<4x128xf32, #tpu.memory_space<vmem>>, vector<4x128xf32>,
    return
  }
  func.func @transform_0(%arg0: i32) -> (i32, i32) {
    %c0_i32 = arith.constant 0 : i32
    %c0_i32_0 = arith.constant 0 : i32
    return %arg0, %c0_i32 : i32, i32
  }
  func.func @transform_1(%arg0: i32) -> (i32, i32) {
    %c0_i32 = arith.constant 0 : i32
    %c0_i32_0 = arith.constant 0 : i32
    %c0_i32_1 = arith.constant 0 : i32
    return %c0_i32, %c0_i32_0 : i32, i32
  }
  func.func @transform_2(%arg0: i32) -> (i32, i32) {
    %c0_i32 = arith.constant 0 : i32
    %c0_i32_0 = arith.constant 0 : i32
    return %arg0, %c0_i32 : i32, i32
  }
}

</mosaic_0001>

<bundles_post_ra>
// kernel: tpu_custom_call.1
= control target key start
LH: loop header
LB: loop body
LE: loop exit
PB: predicated region body
PF: predicated region fallthrough
CT: control target
= control target key end

     0   :  { %7 = vsyncpa [#allocation3], 0  ;;  %s198_s0 = inlined_call_operand.hbm [shape: f32[4,128], index: 0, kind: input, shape index: {}]   ;;  %s199_s1 = inlined_call_operand.hbm [shape: f32[1,128], index: 1, kind: input, shape index: {}]   ;;  %s200_s2 = inlined_call_operand.hbm [shape: f32[4,128], index: 2, kind: output, shape index: {}]  }
   0x1   :  { %8 = vsyncpa [#allocation6], 0 }
   0x2   :  { %9 = vsyncpa [#allocation4], 0  ;;  %s15_s11 = sshll.u32 %s198_s0, 4  ;;  %s171_s12 = smov [#allocation2]   ;;  %s16_s11 = int_to_ptr.hbm [resolvable:$true] %s15_s11 }
   0x3   :  { %s17_s13 = sshll.u32 %s171_s12, 4  ;;  %s26_s16 = sshll.u32 %s199_s1, 4  ;;  %s18_s13 = int_to_ptr.vmem [resolvable:$true] %s17_s13  ;;  %s27_s16 = int_to_ptr.hbm [resolvable:$true] %s26_s16 }
   0x4   :  { %20 = dma.hbm_to_vmem [thread:$0]  %s16_s11, 64, %s18_s13, [#allocation3]  }
   0x5   :  { %s172_s17 = smov [#allocation5]  }
   0x6   :  { %s28_s18 = sshll.u32 %s172_s17, 4  ;;  %s29_s18 = int_to_ptr.vmem [resolvable:$true] %s28_s18 }
   0x7   :  { %31 = dma.hbm_to_vmem [thread:$0]  %s27_s16, 16, %s29_s18, [#allocation6]  }
   0x8   :  { %165 = dma.done.wait [#allocation3], 64  }
   0x9   :  { %166 = vsyncadd [#allocation3], 4294967232 }
   0xa   :  { %167 = dma.done.wait [#allocation6], 16  }
   0xb   :  { %168 = vsyncadd [#allocation6], 4294967280  ;;  %v40_v0 = vld [vmem:[#allocation2] sm:$0xf]  ;;  %v88_v1 = vld [vmem:[#allocation5] ss:$0 sm:$0xff] }
   0xc   :  { %v45_v2 = vmul.f32 %v88_v1, %v40_v0  ;;  %s173_s0 = smov [#allocation7]   ;;  %s73_s21 = sshll.u32 %s200_s2, 4  ;;  %s74_s21 = int_to_ptr.hbm [resolvable:$true] %s73_s21 }
   0xd   :  { %s71_s1 = sshll.u32 %s173_s0, 4  ;;  %s72_s1 = int_to_ptr.vmem [resolvable:$true] %s71_s1 }
   0xe   :  { %v84_v3 = vmul.f32 -1.442695, %v45_v2 }
  0x10   :  { %89 = vpow2.f32 %v84_v3 }
  0x16   :  { %v90_v4 = vpop.eup %89 }
  0x17   :  { %v49_v5 = vadd.f32 1.0, %v90_v4 }
  0x19   :  { %91 = vrcp.f32 %v49_v5  ;;  %v61_v8 = vand.u32 2147483648, %v49_v5  ;;  %vm55_vm0 = vweird.f32 %v49_v5  ;;  %v59_v10 = vand.u32 2147483647, %v49_v5 }
  0x1b   :  { %v62_v12 = vor.u32 1.1754944e-38, %v61_v8  ;;  %vm60_vm3 = vcmp.eq.f32.partialorder %v59_v10, 8.507059e+37 }
  0x1f   :  { %v92_v6 = vpop.eup %91 }
  0x20   :  { %v51_v7 = vmul.f32 %v92_v6, %v49_v5  ;;  %vm56_vm1 = vweird.f32 %v92_v6 }
  0x21   :  { %vm57_vm2 = vmor %vm55_vm0, %vm56_vm1 }
  0x22   :  { %v52_v9 = vsub.f32 1.0, %v51_v7 }
  0x24   :  { %v53_v11 = vmul.f32 %v92_v6, %v52_v9 }
  0x26   :  { %v54_v13 = vadd.f32 %v92_v6, %v53_v11 }
  0x28   :  { %v58_v14 = vsel %vm57_vm2, %v92_v6, %v54_v13 }
  0x29   :  { %v63_v15 = vsel %vm60_vm3, %v62_v12, %v58_v14 }
  0x2a   :  { %65 = vst [vmem:[#allocation7] sm:$0xf] %v63_v15 }
  0x2b   :  { %76 = dma.vmem_to_hbm [thread:$0]  %s72_s1, 64, %s74_s21, [#allocation4]  }
  0x2c   :  { %169 = dma.done.wait [#allocation4], 64  }
  0x2d   :  { %170 = vsyncadd [#allocation4], 4294967232 }
  0x2e   :  { %81 = vsyncpa [#allocation3], 1 }
  0x2f   :  { %82 = vsyncpa [#allocation6], 1 }
  0x30   :  { %83 = vsyncpa [#allocation4], 1 }

</bundles_post_ra>
